<compile_context>
chip_gen: v7x
topology: tpu7x:2x2x1
jax: 0.10.0
libtpu: 0.0.40
codegen_flags: <defaults>
</compile_context>

<pallas_src>
import jax
import jax.numpy as jnp
from jax.experimental import pallas as pl
from jax.experimental.pallas import tpu as pltpu

LANE = 128
ROW_ALIGN = 16  # sublane alignment (covers bf16 packing factor too)


def _round_up(n, m):
    return ((n + m - 1) // m) * m


def _mlp_kernel(x_ref, w1_ref, w2_ref, w3_ref, b_ref, o_ref):
    """Fused 3-layer MLP on one batch tile.

    x_ref : (TB, n_in)  f32   streamed batch tile (last dim = full array dim)
    w*_ref: (in, out)   bf16  pre-transposed, lane-padded, VMEM-resident
    b_ref : (8, max_d)  f32   rows 0..2 = b1, b2, b3 (lane-padded, single DMA)
    o_ref : (TB, d_out) f32   lane-dense 128-wide store
    """
    d_h1 = w1_ref.shape[1]
    d_h2 = w2_ref.shape[1]
    d_out = w3_ref.shape[1]

    # f32 activations (near-exact PyTorch parity); bf16 weights cast up once
    # per tile (tiny VPU cost, kernel is HBM-bound anyway).
    x = x_ref[...]
    w1 = w1_ref[...].astype(jnp.float32)
    w2 = w2_ref[...].astype(jnp.float32)
    w3 = w3_ref[...].astype(jnp.float32)

    # Layer 1: Linear + ReLU
    h1 = jnp.dot(x, w1, preferred_element_type=jnp.float32)
    h1 = jnp.maximum(h1 + b_ref[0:1, :d_h1], 0.0)

    # Layer 2: Linear + ReLU
    h2 = jnp.dot(h1, w2, preferred_element_type=jnp.float32)
    h2 = jnp.maximum(h2 + b_ref[1:2, :d_h2], 0.0)

    # Layer 3 (output): Linear, no activation
    out = jnp.dot(h2, w3, preferred_element_type=jnp.float32)
    o_ref[...] = out + b_ref[2:3, :d_out]


def prepare_mlp_params(params):
    """One-time parameter prep — cache the result alongside the params.

    params: list of (W, b) in PyTorch nn.Linear layout (W: (out, in), b: (out,)).
    Returns a dict of device arrays (transposed, lane-padded bf16 weights and a
    packed f32 bias buffer) plus the logical dims needed by the wrapper.
    """
    (w1, b1), (w2, b2), (w3, b3) = params
    n_in = w1.shape[1]
    n_out = w3.shape[0]

    d_h1 = _round_up(w1.shape[0], LANE)
    d_h2 = _round_up(w2.shape[0], LANE)
    d_out = _round_up(n_out, LANE)
    max_d = max(d_h1, d_h2, d_out)

    def prep_w(w, din_p, dout_p):
        wt = jnp.zeros((din_p, dout_p), jnp.float32)
        wt = wt.at[: w.shape[1], : w.shape[0]].set(w.T)
        return wt.astype(jnp.bfloat16)

    # w1 keeps its first dim at the *logical* n_in so x needs no column pad.
    w1_p = prep_w(w1, n_in, d_h1)
    w2_p = prep_w(w2, d_h1, d_h2)
    w3_p = prep_w(w3, d_h2, d_out)

    # Pack the three biases into one (8, max_d) f32 buffer (single DMA).
    b_pack = jnp.zeros((8, max_d), jnp.float32)
    b_pack = b_pack.at[0, : b1.shape[0]].set(b1)
    b_pack = b_pack.at[1, : b2.shape[0]].set(b2)
    b_pack = b_pack.at[2, : b3.shape[0]].set(b3)

    return {
        "w1": w1_p, "w2": w2_p, "w3": w3_p, "b": b_pack,
        "n_in": n_in, "n_out": n_out, "d_out": d_out,
    }


def mlp_forward(x, prepared, *, block_b=1024):
    """Fused 3-layer MLP forward.

    x: (B, n_in) f32; prepared: output of prepare_mlp_params().
    Returns (B, n_out) f32.  block_b is the batch tile; 1024 hits ~86% of the
    HBM roofline — bump to 2048 on v7x for very large B (still < 8 MiB VMEM).
    """
    B, n_in = x.shape
    assert n_in == prepared["n_in"], "x feature dim does not match params"
    n_out = prepared["n_out"]
    d_out = prepared["d_out"]

    if B <= block_b:
        # Single sublane-aligned tile; pads at most ROW_ALIGN-1 rows.
        TB = _round_up(max(B, 1), ROW_ALIGN)
        B_pad = TB
    else:
        # Stream TB-row tiles straight out of x (no staging copy at all).
        # The last tile may be ragged: Pallas masks out-of-bounds stores, and
        # the garbage it reads there never mixes across rows (row-wise MLP).
        TB = _round_up(block_b, ROW_ALIGN)
        B_pad = B

    x_in = x if B_pad == B else jnp.pad(x, ((0, B_pad - B), (0, 0)))
    grid = (pl.cdiv(B_pad, TB),)

    out_p = pl.pallas_call(
        _mlp_kernel,
        out_shape=jax.ShapeDtypeStruct((B_pad, d_out), jnp.float32),
        grid=grid,
        in_specs=[
            pl.BlockSpec((TB, n_in), lambda i: (i, 0)),             # streamed x tile
            pl.BlockSpec(prepared["w1"].shape, lambda i: (0, 0)),   # resident weights
            pl.BlockSpec(prepared["w2"].shape, lambda i: (0, 0)),
            pl.BlockSpec(prepared["w3"].shape, lambda i: (0, 0)),
            pl.BlockSpec(prepared["b"].shape, lambda i: (0, 0)),    # packed biases
        ],
        out_specs=pl.BlockSpec((TB, d_out), lambda i: (i, 0)),
        compiler_params=pltpu.CompilerParams(
            dimension_semantics=("parallel",),   # shard batch tiles across TCs (v7x)
            vmem_limit_bytes=32 * 1024 * 1024,   # actual use is a few MiB even at TB=2048
        ),
    )(x_in, prepared["w1"], prepared["w2"], prepared["w3"], prepared["b"])

    # Rows >= B are padding garbage (relu(b) / ragged-tile leftovers) and lanes
    # >= n_out are lane padding — never read out_p beyond [:B, :n_out].
    return out_p[:B, :n_out]


def init_linear(key, out_features, in_features):
    """PyTorch-style nn.Linear init: U(-1/sqrt(fan_in), 1/sqrt(fan_in))."""
    kw, kb = jax.random.split(key)
    bound = 1.0 / jnp.sqrt(jnp.float32(in_features))
    w = jax.random.uniform(kw, (out_features, in_features), jnp.float32, -bound, bound)
    b = jax.random.uniform(kb, (out_features,), jnp.float32, -bound, bound)
    return w, b


def reference_forward(x, params, weight_dtype=jnp.float32):
    """Reference MLP.  weight_dtype=bf16 mirrors the kernel's bf16 weight
    storage (activations are f32 in both); weight_dtype=f32 is exact PyTorch."""
    h = x
    n = len(params)
    for i, (w, b) in enumerate(params):
        wt = w.astype(weight_dtype).astype(jnp.float32).T
        h = jnp.dot(h, wt, precision=jax.lax.Precision.HIGHEST) + b
        if i < n - 1:
            h = jnp.maximum(h, 0.0)
    return h


if __name__ == "__main__":
    # Small shapes consistent with the module: MLP([n_inputs] + [nh]*nl + [n_outputs])
    B = 2
    n_inputs = 32
    n_hiddens = 32
    n_layers = 2
    n_outputs = 10

    key = jax.random.PRNGKey(0)
    kx, k1, k2, k3 = jax.random.split(key, 4)

    x = jax.random.normal(kx, (B, n_inputs), jnp.float32)
    sizes = [n_inputs] + [n_hiddens] * n_layers + [n_outputs]
    params = [
        init_linear(k1, sizes[1], sizes[0]),
        init_linear(k2, sizes[2], sizes[1]),
        init_linear(k3, sizes[3], sizes[2]),
    ]

    # One-time prep (would be cached with the model, not rebuilt per forward).
    prepared = prepare_mlp_params(params)

    out = mlp_forward(x, prepared)
    out = jax.block_until_ready(out)
    assert out.shape == (B, n_outputs)

    # Check against a reference with bf16-rounded weights / f32 activations
    # (mirrors the kernel arithmetic).
    ref_bf16w = reference_forward(x, params, weight_dtype=jnp.bfloat16)
    assert jnp.allclose(out, ref_bf16w, atol=1e-2, rtol=1e-2)

    # Loose check against the exact f32 PyTorch semantics.
    ref_f32 = reference_forward(x, params, weight_dtype=jnp.float32)
    assert jnp.allclose(out, ref_f32, atol=5e-2, rtol=5e-2)

    # TODO(synk): Net's replay-memory bookkeeping (observe, select_k_centers,
    # gradient gathering, cosine-similarity clustering, SGD updates) is
    # training-time control flow, not part of forward(); intentionally not
    # ported to a kernel.
    print("KERNEL_OK")
</pallas_src>

<mosaic_0001>
module attributes {stable_mosaic.version = 11 : i64} {
  func.func @_mlp_kernel(%arg0: i32, %arg1: memref<16x32xf32, #tpu.memory_space<vmem>>, %arg2: memref<32x128xbf16, #tpu.memory_space<vmem>>, %arg3: memref<128x128xbf16, #tpu.memory_space<vmem>>, %arg4: memref<128x128xbf16, #tpu.memory_space<vmem>>, %arg5: memref<8x128xf32, #tpu.memory_space<vmem>>, %arg6: memref<16x128xf32, #tpu.memory_space<vmem>>) attributes {dimension_semantics = [#tpu.dimension_semantics<parallel>], iteration_bounds = array<i64: 1>, scalar_prefetch = 0 : i64, scratch_operands = 0 : i64, tpu.core_type = #tpu.core_type<tc>, window_params = [{transform_indices = @transform_0, window_bounds = array<i64: 16, 32>}, {pipeline_mode = #tpu.pipeline_mode<synchronous>, transform_indices = @transform_1, window_bounds = array<i64: 32, 128>}, {pipeline_mode = #tpu.pipeline_mode<synchronous>, transform_indices = @transform_2, window_bounds = array<i64: 128, 128>}, {pipeline_mode = #tpu.pipeline_mode<synchronous>, transform_indices = @transform_3, window_bounds = array<i64: 128, 128>}, {pipeline_mode = #tpu.pipeline_mode<synchronous>, transform_indices = @transform_4, window_bounds = array<i64: 8, 128>}, {transform_indices = @transform_5, window_bounds = array<i64: 16, 128>}]} {
    %c0 = arith.constant 0 : index
    %c0_0 = arith.constant 0 : index
    %0 = vector.load %arg1[%c0, %c0_0] : memref<16x32xf32, #tpu.memory_space<vmem>>, vector<16x32xf32>
    %c0_1 = arith.constant 0 : index
    %c0_2 = arith.constant 0 : index
    %1 = vector.load %arg2[%c0_1, %c0_2] : memref<32x128xbf16, #tpu.memory_space<vmem>>, vector<32x128xbf16>
    %2 = arith.extf %1 : vector<32x128xbf16> to vector<32x128xf32>
    %c0_3 = arith.constant 0 : index
    %c0_4 = arith.constant 0 : index
    %3 = vector.load %arg3[%c0_3, %c0_4] : memref<128x128xbf16, #tpu.memory_space<vmem>>, vector<128x128xbf16>
    %4 = arith.extf %3 : vector<128x128xbf16> to vector<128x128xf32>
    %c0_5 = arith.constant 0 : index
    %c0_6 = arith.constant 0 : index
    %5 = vector.load %arg4[%c0_5, %c0_6] : memref<128x128xbf16, #tpu.memory_space<vmem>>, vector<128x128xbf16>
    %6 = arith.extf %5 : vector<128x128xbf16> to vector<128x128xf32>
    %cst = arith.constant dense<0.000000e+00> : vector<16x128xf32>
    %7 = tpu.matmul %0, %2, %cst {dimension_numbers = #tpu.dot_dimension_numbers<[1], [0], [0], [1], [0, 0, 1, 1], [], []>} : vector<16x32xf32>, vector<32x128xf32>, vector<16x128xf32> -> vector<16x128xf32>
    %c0_7 = arith.constant 0 : index
    %c0_8 = arith.constant 0 : index
    %8 = vector.load %arg5[%c0_7, %c0_8] : memref<8x128xf32, #tpu.memory_space<vmem>>, vector<1x128xf32>
    %9 = vector.broadcast %8 : vector<1x128xf32> to vector<16x128xf32>
    %10 = arith.addf %7, %9 : vector<16x128xf32>
    %cst_9 = arith.constant 0.000000e+00 : f32
    %11 = vector.broadcast %cst_9 : f32 to vector<16x128xf32>
    %12 = arith.maximumf %10, %11 : vector<16x128xf32>
    %cst_10 = arith.constant dense<0.000000e+00> : vector<16x128xf32>
    %13 = tpu.matmul %12, %4, %cst_10 {dimension_numbers = #tpu.dot_dimension_numbers<[1], [0], [0], [1], [0, 0, 1, 1], [], []>} : vector<16x128xf32>, vector<128x128xf32>, vector<16x128xf32> -> vector<16x128xf32>
    %c1 = arith.constant 1 : index
    %c0_11 = arith.constant 0 : index
    %14 = vector.load %arg5[%c1, %c0_11] : memref<8x128xf32, #tpu.memory_space<vmem>>, vector<1x128xf32>
    %15 = vector.broadcast %14 : vector<1x128xf32> to vector<16x128xf32>
    %16 = arith.addf %13, %15 : vector<16x128xf32>
    %cst_12 = arith.constant 0.000000e+00 : f32
    %17 = vector.broadcast %cst_12 : f32 to vector<16x128xf32>
    %18 = arith.maximumf %16, %17 : vector<16x128xf32>
    %cst_13 = arith.constant dense<0.000000e+00> : vector<16x128xf32>
    %19 = tpu.matmul %18, %6, %cst_13 {dimension_numbers = #tpu.dot_dimension_numbers<[1], [0], [0], [1], [0, 0, 1, 1], [], []>} : vector<16x128xf32>, vector<128x128xf32>, vector<16x128xf32> -> vector<16x128xf32>
    %c2 = arith.constant 2 : index
    %c0_14 = arith.constant 0 : index
    %20 = vector.load %arg5[%c2, %c0_14] : memref<8x128xf32, #tpu.memory_space<vmem>>, vector<1x128xf32>
    %21 = vector.broadcast %20 : vector<1x128xf32> to vector<16x128xf32>
    %22 = arith.addf %19, %21 : vector<16x128xf32>
    %c0_15 = arith.constant 0 : index
    %c0_16 = arith.constant 0 : index
    %23 = vector.load %arg6[%c0_15, %c0_16] : memref<16x128xf32, #tpu.memory_space<vmem>>, vector<16x128xf32>
    tpu.vector_store %arg6[%c0_15, %c0_16], %22 {strides = array<i32>} : memref<16x128xf32, #tpu.memory_space<vmem>>, vector<16x128xf32>,
    return
  }
  func.func @transform_0(%arg0: i32) -> (i32, i32) {
    %c0_i32 = arith.constant 0 : i32
    %c0_i32_0 = arith.constant 0 : i32
    return %arg0, %c0_i32 : i32, i32
  }
  func.func @transform_1(%arg0: i32) -> (i32, i32) {
    %c0_i32 = arith.constant 0 : i32
    %c0_i32_0 = arith.constant 0 : i32
    %c0_i32_1 = arith.constant 0 : i32
    return %c0_i32, %c0_i32_0 : i32, i32
  }
  func.func @transform_2(%arg0: i32) -> (i32, i32) {
    %c0_i32 = arith.constant 0 : i32
    %c0_i32_0 = arith.constant 0 : i32
    %c0_i32_1 = arith.constant 0 : i32
    return %c0_i32, %c0_i32_0 : i32, i32
  }
  func.func @transform_3(%arg0: i32) -> (i32, i32) {
    %c0_i32 = arith.constant 0 : i32
    %c0_i32_0 = arith.constant 0 : i32
    %c0_i32_1 = arith.constant 0 : i32
    return %c0_i32, %c0_i32_0 : i32, i32
  }
  func.func @transform_4(%arg0: i32) -> (i32, i32) {
    %c0_i32 = arith.constant 0 : i32
    %c0_i32_0 = arith.constant 0 : i32
    %c0_i32_1 = arith.constant 0 : i32
    return %c0_i32, %c0_i32_0 : i32, i32
  }
  func.func @transform_5(%arg0: i32) -> (i32, i32) {
    %c0_i32 = arith.constant 0 : i32
    %c0_i32_0 = arith.constant 0 : i32
    return %arg0, %c0_i32 : i32, i32
  }
}

</mosaic_0001>

<bundles_post_ra>
// kernel: tpu_custom_call.1
= control target key start
LH: loop header
LB: loop body
LE: loop exit
PB: predicated region body
PF: predicated region fallthrough
CT: control target
= control target key end

     0   :  { %10 = vsyncpa [#allocation3], 0  ;;  %s968_s0 = inlined_call_operand.hbm [shape: f32[16,32], index: 0, kind: input, shape index: {}]   ;;  %s969_s1 = inlined_call_operand.hbm [shape: bf16[32,128], index: 1, kind: input, shape index: {}]   ;;  %s970_s2 = inlined_call_operand.hbm [shape: bf16[128,128], index: 2, kind: input, shape index: {}]   ;;  %s971_s3 = inlined_call_operand.hbm [shape: bf16[128,128], index: 3, kind: input, shape index: {}]   ;;  %s972_s4 = inlined_call_operand.vmem [shape: f32[8,128], index: 4, kind: input, shape index: {}]   ;;  %s973_s5 = inlined_call_operand.hbm [shape: f32[16,128], index: 5, kind: output, shape index: {}]  }
   0x1   :  { %11 = vsyncpa [#allocation6], 0 }
   0x2   :  { %12 = vsyncpa [#allocation9], 0 }
   0x3   :  { %13 = vsyncpa [#allocation4], 0  ;;  %s836_s18 = smov [#allocation5]   ;;  %s718_s22 = scalar_lea.hbm %s969_s1, 256 }
   0x4   :  { %s31_s19 = sshll.u32 %s836_s18, 4  ;;  %p719_p0 = scmp.ne.s32.totalorder %s969_s1, %s718_s22  ;;  %s32_s19 = int_to_ptr.vmem [resolvable:$true] %s31_s19 }
   0x5   :  { %p722_p1 = scmp.lt.u32.totalorder %s718_s22, %s969_s1 }
   0x7   :  { %p724_p2 = pnand %p722_p1, %p719_p0 }
   0x9   :  { %727 = shalt.err (!%p724_p2)
}
   0xa   :  { %s728_s27 = scalar_lea.vmem %s32_s19, 256  ;;  %p733_p4 = scmp.lt.s32.totalorder %s32_s19, %s32_s19 }
   0xb   :  { %p729_p3 = scmp.ne.s32.totalorder %s32_s19, %s728_s27  ;;  %p734_p5 = scmp.lt.s32.totalorder %s728_s27, %s728_s27 }
   0xd   :  { %p735_p6 = por %p734_p5, %p733_p4 }
   0xf   :  { %p736_p7 = pnand %p735_p6, %p729_p3 }
  0x11   :  { %739 = shalt.err (!%p736_p7)
}
  0x12   :  { %s837_s28 = smov 64   ;;  %s838_s29 = smov 4  }
  0x13   :  { %37 = dma.hbm_to_vmem [thread:$0]  %s969_s1, 256, %s32_s19, [#allocation6], %s837_s28, %s837_s28, %s838_s29  }
  0x14   :  { %s839_s7 = smov [#allocation2]   ;;  %s740_s11 = scalar_lea.hbm %s968_s0, 256 }
  0x15   :  { %s19_s8 = sshll.u32 %s839_s7, 4  ;;  %p741_p8 = scmp.ne.s32.totalorder %s968_s0, %s740_s11  ;;  %s20_s8 = int_to_ptr.vmem [resolvable:$true] %s19_s8 }
  0x16   :  { %p744_p9 = scmp.lt.u32.totalorder %s740_s11, %s968_s0 }
  0x18   :  { %p746_p10 = pnand %p744_p9, %p741_p8 }
  0x1a   :  { %749 = shalt.err (!%p746_p10)
}
  0x1b   :  { %s750_s16 = scalar_lea.vmem %s20_s8, 256  ;;  %p755_p12 = scmp.lt.s32.totalorder %s20_s8, %s20_s8 }
  0x1c   :  { %p751_p11 = scmp.ne.s32.totalorder %s20_s8, %s750_s16  ;;  %p756_p13 = scmp.lt.s32.totalorder %s750_s16, %s750_s16 }
  0x1e   :  { %p757_p0 = por %p756_p13, %p755_p12 }
  0x20   :  { %p758_p1 = pnand %p757_p0, %p751_p11 }
  0x22   :  { %761 = shalt.err (!%p758_p1)
}
  0x23   :  { %s840_s1 = smov 128   ;;  %s841_s17 = smov 8  }
  0x24   :  { %25 = dma.hbm_to_vmem [thread:$0]  %s968_s0, 256, %s20_s8, [#allocation3], %s840_s1, %s840_s1, %s841_s17  }
  0x25   :  { %s842_s20 = smov [#allocation7]   ;;  %s843_s22 = smov [#allocation8]  }
  0x26   :  { %s43_s21 = sshll.u32 %s842_s20, 4  ;;  %s55_s23 = sshll.u32 %s843_s22, 4  ;;  %s44_s21 = int_to_ptr.vmem [resolvable:$true] %s43_s21  ;;  %s905_s23 = int_to_ptr.vmem [resolvable:$true] %s55_s23 }
  0x27   :  { %s762_s26 = scalar_lea.hbm %s970_s2, 1024 }
  0x28   :  { %p763_p2 = scmp.ne.s32.totalorder %s970_s2, %s762_s26  ;;  %p766_p3 = scmp.lt.u32.totalorder %s762_s26, %s970_s2 }
  0x2a   :  { %p768_p4 = pnand %p766_p3, %p763_p2 }
  0x2c   :  { %771 = shalt.err (!%p768_p4)
}
  0x2d   :  { %s772_s0 = scalar_lea.vmem %s44_s21, 1024  ;;  %p777_p6 = scmp.lt.s32.totalorder %s44_s21, %s44_s21 }
  0x2e   :  { %p773_p5 = scmp.ne.s32.totalorder %s44_s21, %s772_s0  ;;  %p778_p7 = scmp.lt.s32.totalorder %s772_s0, %s772_s0 }
  0x30   :  { %p779_p8 = por %p778_p7, %p777_p6 }
  0x32   :  { %p780_p9 = pnand %p779_p8, %p773_p5 }
  0x34   :  { %783 = shalt.err (!%p780_p9)
}
  0x35   :  { %49 = dma.hbm_to_vmem [thread:$0]  %s970_s2, 1024, %s44_s21, [#allocation6], %s837_s28, %s837_s28, %s838_s29  }
  0x36   :  { %s784_s12 = scalar_lea.hbm %s971_s3, 1024 }
  0x37   :  { %p785_p10 = scmp.ne.s32.totalorder %s971_s3, %s784_s12  ;;  %p788_p11 = scmp.lt.u32.totalorder %s784_s12, %s971_s3 }
  0x39   :  { %p790_p12 = pnand %p788_p11, %p785_p10 }
  0x3b   :  { %793 = shalt.err (!%p790_p12)
}
  0x3c   :  { %s794_s18 = scalar_lea.vmem %s905_s23, 1024  ;;  %p799_p0 = scmp.lt.s32.totalorder %s905_s23, %s905_s23 }
  0x3d   :  { %p795_p13 = scmp.ne.s32.totalorder %s905_s23, %s794_s18  ;;  %p800_p1 = scmp.lt.s32.totalorder %s794_s18, %s794_s18 }
  0x3f   :  { %p801_p2 = por %p800_p1, %p799_p0 }
  0x41   :  { %p802_p3 = pnand %p801_p2, %p795_p13 }
  0x43   :  { %805 = shalt.err (!%p802_p3)
}
  0x44   :  { %61 = dma.hbm_to_vmem [thread:$0]  %s971_s3, 1024, %s905_s23, [#allocation9], %s837_s28, %s837_s28, %s838_s29  }
  0x45   :  { %828 = dma.done.wait [#allocation3], 256  }
  0x46   :  { %829 = vsyncadd [#allocation3], 4294967040 }
  0x47   :  { %830 = dma.done.wait [#allocation6], 1280  }
  0x48   :  { %831 = vsyncadd [#allocation6], 4294966016 }
  0x49   :  { %832 = dma.done.wait [#allocation9], 1024  }
  0x4a   :  { %833 = vsyncadd [#allocation9], 4294966272  ;;  %vm155_vm0 = vcmask 261120   ;;  %v428_v0 = vld [vmem:[#allocation5] sm:$0xff]   ;;  %v499_v1 = vld [vmem:[#allocation5 + $0x8] sm:$0xff]   ;;  %s844_s23 = smov [#allocation10]  }
  0x4b   :  { %v76_v2 = vld [vmem:[#allocation2] sm:$0xff]  ;;  %638 = vmatprep.subr.bf16.mxu0 %v428_v0  ;;  %v500_v4 = vld [vmem:[#allocation7 + $0x8] sm:$0xff]   ;;  %v501_v5 = vld [vmem:[#allocation7 + $0x10] sm:$0xff]   ;;  %s408_s24 = sshll.u32 %s844_s23, 4  ;;  %s409_s24 = int_to_ptr.vmem [resolvable:$true] %s408_s24 }
  0x4c   :  { %564 = vmatprep.mubr.msk.f32.mxu0 %vm155_vm0, %v76_v2  ;;  %v436_v3 = vld [vmem:[#allocation7] sm:$0xff]   ;;  %640 = vmatpush3.bf16.msra.mxu0 %v428_v0  ;;  %v77_v6 = vld [vmem:[#allocation2 + $0x8] sm:$0xff]  ;;  %v502_v7 = vld [vmem:[#allocation7 + $0x18] sm:$0xff]   ;;  %s806_s25 = scalar_lea.vmem %s409_s24, 256  ;;  %p811_p5 = scmp.lt.s32.totalorder %s409_s24, %s409_s24 }
  0x4d   :  { %646 = vmatprep.subr.bf16.mxu1 %v436_v3  ;;  %642 = vmatprep.subr.bf16.mxu0 %v499_v1  ;;  %v503_v8 = vld [vmem:[#allocation7 + $0x20] sm:$0xff]   ;;  %v504_v9 = vld [vmem:[#allocation7 + $0x28] sm:$0xff]   ;;  %v505_v10 = vld [vmem:[#allocation7 + $0x30] sm:$0xff]   ;;  %p807_p4 = scmp.ne.s32.totalorder %s409_s24, %s806_s25  ;;  %p812_p6 = scmp.lt.s32.totalorder %s806_s25, %s806_s25 }
  0x4e   :  { %648 = vmatpush3.bf16.msra.mxu1 %v436_v3  ;;  %v506_v11 = vld [vmem:[#allocation7 + $0x38] sm:$0xff]   ;;  %v468_v12 = vld [vmem:[#allocation8] sm:$0xff]   ;;  %v507_v13 = vld [vmem:[#allocation8 + $0x8] sm:$0xff]  }
  0x4f   :  { %650 = vmatprep.subr.bf16.mxu1 %v500_v4  ;;  %v508_v14 = vld [vmem:[#allocation8 + $0x10] sm:$0xff]   ;;  %v509_v15 = vld [vmem:[#allocation8 + $0x18] sm:$0xff]   ;;  %v510_v16 = vld [vmem:[#allocation8 + $0x20] sm:$0xff]   ;;  %p813_p7 = por %p812_p6, %p811_p5 }
  0x50   :  { %644 = vmatpush3.bf16.msra.mxu0 %v499_v1  ;;  %v511_v17 = vld [vmem:[#allocation8 + $0x28] sm:$0xff]   ;;  %v512_v18 = vld [vmem:[#allocation8 + $0x30] sm:$0xff]   ;;  %v422_v19 = vld [vmem:[%s972_s4] ss:$0 sm:$0xff] }
  0x51   :  { %678 = vmatprep.subr.bf16.mxu0 %v468_v12  ;;  %v513_v26 = vld [vmem:[#allocation8 + $0x38] sm:$0xff]   ;;  %v425_v27 = vld [vmem:[%s972_s4 + $0x1] ss:$0 sm:$0xff]  ;;  %v426_v34 = vld [vmem:[%s972_s4 + $0x2] ss:$0 sm:$0xff]  ;;  %p814_p8 = pnand %p813_p7, %p807_p4 }
  0x52   :  { %652 = vmatpush3.bf16.msra.mxu1 %v500_v4 }
  0x53   :  { %654 = vmatprep.subr.bf16.mxu1 %v501_v5  ;;  %565 = vmatmul.mubr.msk.f32.vlgmr.msra.gmra.mrb[0].mxu0 %vm155_vm0, %v77_v6 }
  0x54   :  { %680 = vmatpush3.bf16.msra.mxu0 %v468_v12 }
  0x55   :  { %682 = vmatprep.subr.bf16.mxu0 %v507_v13 }
  0x56   :  { %656 = vmatpush3.bf16.msra.mxu1 %v501_v5 }
  0x57   :  { %658 = vmatprep.subr.bf16.mxu1 %v502_v7 }
  0x58   :  { %684 = vmatpush3.bf16.msra.mxu0 %v507_v13 }
  0x59   :  { %686 = vmatprep.subr.bf16.mxu0 %v508_v14 }
  0x5a   :  { %660 = vmatpush3.bf16.msra.mxu1 %v502_v7 }
  0x5b   :  { %662 = vmatprep.subr.bf16.mxu1 %v503_v8 }
  0x5c   :  { %688 = vmatpush3.bf16.msra.mxu0 %v508_v14 }
  0x5d   :  { %690 = vmatprep.subr.bf16.mxu0 %v509_v15 }
  0x5e   :  { %664 = vmatpush3.bf16.msra.mxu1 %v503_v8 }
  0x5f   :  { %666 = vmatprep.subr.bf16.mxu1 %v504_v9 }
  0x60   :  { %692 = vmatpush3.bf16.msra.mxu0 %v509_v15 }
  0x61   :  { %694 = vmatprep.subr.bf16.mxu0 %v510_v16 }
  0x62   :  { %668 = vmatpush3.bf16.msra.mxu1 %v504_v9 }
  0x63   :  { %670 = vmatprep.subr.bf16.mxu1 %v505_v10 }
  0x64   :  { %696 = vmatpush3.bf16.msra.mxu0 %v510_v16 }
  0x65   :  { %698 = vmatprep.subr.bf16.mxu0 %v511_v17 }
  0x66   :  { %672 = vmatpush3.bf16.msra.mxu1 %v505_v10 }
  0x67   :  { %674 = vmatprep.subr.bf16.mxu1 %v506_v11 }
  0x68   :  { %700 = vmatpush3.bf16.msra.mxu0 %v511_v17 }
  0x69   :  { %702 = vmatprep.subr.bf16.mxu0 %v512_v18 }
  0x6a   :  { %676 = vmatpush3.bf16.msra.mxu1 %v506_v11 }
  0x6c   :  { %704 = vmatpush3.bf16.msra.mxu0 %v512_v18 }
  0x6d   :  { %706 = vmatprep.subr.bf16.mxu0 %v513_v26 }
  0x70   :  { %708 = vmatpush3.bf16.msra.mxu0 %v513_v26 }
 0x126   :  { %v566_v20 = vpop.f32.mrb[0].mxu0 }
 0x127   :  { %v234_v21 = vadd.f32 %v566_v20, %v422_v19  ;;  %v228_v22 = vpop.f32.mrb[1].mxu0 }
 0x128   :  { %v229_v23 = vadd.f32 %v422_v19, %v228_v22 }
 0x129   :  { %v238_v25 = vmax.f32 %v234_v21, 0.0 }
 0x12a   :  { %v237_v24 = vmax.f32 %v229_v23, 0.0 }
 0x12c   :  { %599 = vmatprep.mubr.f32.mxu1 %v237_v24 }
 0x12d   :  { %600 = vmatmul.mubr.f32.vlgmr.msra.gmra.mrb[0].mxu1 %v238_v25 }
 0x200   :  { %v601_v28 = vpop.f32.mrb[0].mxu1 }
 0x201   :  { %v316_v29 = vadd.f32 %v601_v28, %v425_v27  ;;  %v310_v30 = vpop.f32.mrb[1].mxu1 }
 0x202   :  { %v311_v31 = vadd.f32 %v425_v27, %v310_v30 }
 0x203   :  { %v320_v33 = vmax.f32 %v316_v29, 0.0 }
 0x204   :  { %v319_v32 = vmax.f32 %v311_v31, 0.0 }
 0x206   :  { %634 = vmatprep.mubr.f32.mxu0 %v319_v32 }
 0x207   :  { %635 = vmatmul.mubr.f32.vlgmr.msra.gmra.mrb[2].mxu0 %v320_v33 }
 0x2da   :  { %v636_v35 = vpop.f32.mrb[2].mxu0 }
 0x2db   :  { %v398_v36 = vadd.f32 %v636_v35, %v426_v34  ;;  %v392_v37 = vpop.f32.mrb[3].mxu0 }
 0x2dc   :  { %v393_v38 = vadd.f32 %v426_v34, %v392_v37 }
 0x2dd   :  { %402 = vst [vmem:[#allocation10 + $0x8] sm:$0xff] %v398_v36 }
 0x2de   :  { %401 = vst [vmem:[#allocation10] sm:$0xff] %v393_v38 }
 0x2df   :  { %817 = shalt.err (!%p814_p8)
}
 0x2e0   :  { %s818_s4 = scalar_lea.hbm %s973_s5, 256 }
 0x2e1   :  { %p819_p9 = scmp.ne.s32.totalorder %s973_s5, %s818_s4  ;;  %p822_p10 = scmp.lt.u32.totalorder %s818_s4, %s973_s5 }
 0x2e3   :  { %p824_p11 = pnand %p822_p10, %p819_p9 }
 0x2e5   :  { %827 = shalt.err (!%p824_p11)
}
 0x2e6   :  { %414 = dma.vmem_to_hbm [thread:$0]  %s409_s24, 256, %s973_s5, [#allocation4], %s840_s1, %s840_s1, %s841_s17  }
 0x2e7   :  { %834 = dma.done.wait [#allocation4], 256  }
 0x2e8   :  { %835 = vsyncadd [#allocation4], 4294967040 }
 0x2e9   :  { %418 = vsyncpa [#allocation3], 1 }
 0x2ea   :  { %419 = vsyncpa [#allocation6], 1 }
 0x2eb   :  { %420 = vsyncpa [#allocation9], 1 }
 0x2ec   :  { %421 = vsyncpa [#allocation4], 1 }

</bundles_post_ra>
